<compile_context>
chip_gen: v5e
topology: v5e:2x2
jax: 0.10.0
libtpu: 0.0.40
codegen_flags: <defaults>
</compile_context>

<pallas_src>
import jax
import jax.numpy as jnp
from jax.experimental import pallas as pl
from jax.experimental.pallas import tpu as pltpu


def _edge_features_kernel(e_ref, vrow_ref, vcol_ref, w_ref, o_ref):
    # e_ref:    (1, TI, P, L)  row-tile of (possibly lane-packed) edge features
    # vrow_ref: (1, TI, L)     per-row (i) contribution: V[i] + 0.25*U.bias, lane-tiled
    # vcol_ref: (1, P, L)      per-col (j) contribution: V[j], lane-packed
    # w_ref:    (L, L)         0.25 * U.weight^T (block-diagonal-packed when L > H)
    ti, p, l = e_ref.shape[1], e_ref.shape[2], e_ref.shape[3]

    # Collapse leading dims -> one long-M 2D MXU matmul; L stays the lane axis and the
    # wrapper guarantees p % 8 == 0 (or p == full dim) so the collapse is layout-clean.
    e2 = e_ref[0].reshape(ti * p, l)
    u2 = jnp.dot(e2, w_ref[...], preferred_element_type=jnp.float32)
    u3 = u2.reshape(ti, p, l)

    # e_new[i, j] = U_scaled[i, j] + V[i] + V[j]
    out = u3 + vrow_ref[0][:, None, :] + vcol_ref[0][None, :, :]
    o_ref[0] = out.astype(o_ref.dtype)


def _pick_row_tile(n_rows, row_elems, itemsize, budget_bytes):
    """Largest row-tile TI (divisor of n_rows) whose live VMEM footprint fits the budget."""
    # Per row of the tile: e tile (x2 buffers) + out tile (x2 buffers) + f32 temporaries.
    per_row = row_elems * (4 * itemsize + 8)
    target = max(1, budget_bytes // max(per_row, 1))
    if target >= n_rows:
        return n_rows
    cands = [d for d in range(1, n_rows + 1) if n_rows % d == 0 and d <= target]
    # Prefer multiples of 8 so the (1, TI, L) V-row block stays sublane-aligned.
    mult8 = [d for d in cands if d % 8 == 0]
    return max(mult8) if mult8 else max(cands)


def edge_features(x, e, u_w, u_b, v_w, v_b):
    """x: (B, N, H), e: (B, N, N, H); u_w/v_w: (H, H) torch-style (out, in); u_b/v_b: (H,)."""
    B, N, H = x.shape
    assert e.shape == (B, N, N, H)
    dtype = e.dtype
    itemsize = jnp.dtype(dtype).itemsize

    # Fold constant scalings into parameters (runs once in XLA, never per-element in-kernel).
    u_wt = jnp.transpose(u_w).astype(jnp.float32) * 0.25        # (H, H): 0.25 * U.weight^T
    v_wt = jnp.transpose(v_w).astype(jnp.float32)               # (H, H)

    # Hoist the tiny V matmul out of the Pallas kernel (it would be recomputed per tile).
    V = (jnp.dot(x.astype(jnp.float32), v_wt) + v_b.astype(jnp.float32)) * 0.5  # (B, N, H)
    v_row = (V + 0.25 * u_b.astype(jnp.float32)).astype(dtype)  # row (i): carries folded U bias
    v_col = V.astype(dtype)                                     # col (j)

    # Lane packing: fold G = 128 // H consecutive columns j into the lane axis when possible.
    G = 128 // H if (H < 128 and 128 % H == 0) else 1
    if G > 1 and N % G == 0 and (N // G) % 8 == 0:
        P, L = N // G, G * H
        e_k = e.reshape(B, N, P, L)                                        # contiguous -> free
        w_k = jnp.kron(jnp.eye(G, dtype=jnp.float32), u_wt).astype(dtype)  # block-diag weight
        vrow_k = jnp.tile(v_row, (1, 1, G))                                # (B, N, L)
        vcol_k = v_col.reshape(B, P, L)                                    # contiguous -> free
    else:
        # TODO(synk): for H that does not divide 128 (and H < 128) the last dim stays
        # lane-masked; padding/packing H in the model layout would be needed for full lanes.
        P, L = N, H
        e_k = e
        w_k = u_wt.astype(dtype)
        vrow_k = v_row
        vcol_k = v_col

    # Row tiling sized for the smallest-VMEM generation (v7x: 64 MiB phys / 32 MiB scoped).
    vmem_budget = 20 * 1024 * 1024
    TI = _pick_row_tile(N, P * L, itemsize, vmem_budget)
    grid = (B, N // TI)

    cost = pl.CostEstimate(
        flops=2 * B * N * P * L * L,
        transcendentals=0,
        bytes_accessed=(2 * B * N * N * H + B * N * (L + H) + L * L) * itemsize,
    )

    out_packed = pl.pallas_call(
        _edge_features_kernel,
        out_shape=jax.ShapeDtypeStruct((B, N, P, L), dtype),
        grid_spec=pltpu.PrefetchScalarGridSpec(
            num_scalar_prefetch=0,
            grid=grid,
            in_specs=[
                pl.BlockSpec((1, TI, P, L), lambda b, i: (b, i, 0, 0)),  # e row tile
                pl.BlockSpec((1, TI, L), lambda b, i: (b, i, 0)),        # V rows (index i)
                pl.BlockSpec((1, P, L), lambda b, i: (b, 0, 0)),         # V cols (index j, resident)
                pl.BlockSpec((L, L), lambda b, i: (0, 0)),               # packed 0.25*U^T
            ],
            out_specs=pl.BlockSpec((1, TI, P, L), lambda b, i: (b, i, 0, 0)),
        ),
        compiler_params=pltpu.CompilerParams(
            # No reduction axis: every (batch, row-tile) output is independent, so both
            # grid axes can be sharded across TensorCores (keeps both v7x TCs busy even
            # when B == 1).
            dimension_semantics=("parallel", "parallel"),
            vmem_limit_bytes=32 * 1024 * 1024,
        ),
        cost_estimate=cost,
    )(e_k, vrow_k, vcol_k, w_k)

    return out_packed.reshape(B, N, N, H)


def edge_features_ref(x, e, u_w, u_b, v_w, v_b):
    """Pure-JAX reference mirroring the torch forward."""
    U = (jnp.einsum("bijh,oh->bijo", e, u_w) + u_b) / 2.0
    V = (jnp.einsum("bnh,oh->bno", x, v_w) + v_b) / 2.0
    Wx = V[:, None, :, :]   # unsqueeze(1) -> index j
    Vx = V[:, :, None, :]   # unsqueeze(2) -> index i
    return U / 2.0 + Vx + Wx


if __name__ == "__main__":
    B, N, H = 2, 32, 32   # small shapes; N*H = 1024 so the lane-packed path is exercised

    key = jax.random.PRNGKey(0)
    kx, ke, kuw, kub, kvw, kvb = jax.random.split(key, 6)

    x = jax.random.normal(kx, (B, N, H), dtype=jnp.float32)
    e = jax.random.normal(ke, (B, N, N, H), dtype=jnp.float32)

    # Torch-style parameter shapes: weight (out, in), bias (out,)
    bound = 1.0 / (H ** 0.5)
    u_w = jax.random.uniform(kuw, (H, H), minval=-bound, maxval=bound, dtype=jnp.float32)
    u_b = jax.random.uniform(kub, (H,), minval=-bound, maxval=bound, dtype=jnp.float32)
    v_w = jax.random.uniform(kvw, (H, H), minval=-bound, maxval=bound, dtype=jnp.float32)
    v_b = jax.random.uniform(kvb, (H,), minval=-bound, maxval=bound, dtype=jnp.float32)

    out = edge_features(x, e, u_w, u_b, v_w, v_b)
    out = jax.block_until_ready(out)

    ref = edge_features_ref(x, e, u_w, u_b, v_w, v_b)
    assert out.shape == (B, N, N, H)
    assert jnp.allclose(out, ref, atol=1e-4, rtol=1e-4), "mismatch vs reference"

    print("KERNEL_OK")
</pallas_src>

<mosaic_0001>
module attributes {stable_mosaic.version = 11 : i64} {
  func.func @_edge_features_kernel(%arg0: i32, %arg1: i32, %arg2: memref<1x32x8x128xf32, #tpu.memory_space<vmem>>, %arg3: memref<1x32x128xf32, #tpu.memory_space<vmem>>, %arg4: memref<1x8x128xf32, #tpu.memory_space<vmem>>, %arg5: memref<128x128xf32, #tpu.memory_space<vmem>>, %arg6: memref<1x32x8x128xf32, #tpu.memory_space<vmem>>) attributes {dimension_semantics = [#tpu.dimension_semantics<parallel>, #tpu.dimension_semantics<parallel>], iteration_bounds = array<i64: 2, 1>, scalar_prefetch = 0 : i64, scratch_operands = 0 : i64, tpu.core_type = #tpu.core_type<tc>, window_params = [{transform_indices = @transform_0, window_bounds = array<i64: 1, 32, 8, 128>}, {transform_indices = @transform_1, window_bounds = array<i64: 1, 32, 128>}, {transform_indices = @transform_2, window_bounds = array<i64: 1, 8, 128>}, {pipeline_mode = #tpu.pipeline_mode<synchronous>, transform_indices = @transform_3, window_bounds = array<i64: 128, 128>}, {transform_indices = @transform_4, window_bounds = array<i64: 1, 32, 8, 128>}]} {
    %c0 = arith.constant 0 : index
    %c0_0 = arith.constant 0 : index
    %c0_1 = arith.constant 0 : index
    %c0_2 = arith.constant 0 : index
    %0 = vector.load %arg2[%c0, %c0_0, %c0_1, %c0_2] : memref<1x32x8x128xf32, #tpu.memory_space<vmem>>, vector<1x32x8x128xf32>
    %1 = vector.shape_cast %0 : vector<1x32x8x128xf32> to vector<32x8x128xf32>
    %2 = vector.shape_cast %1 : vector<32x8x128xf32> to vector<256x128xf32>
    %c0_3 = arith.constant 0 : index
    %c0_4 = arith.constant 0 : index
    %3 = vector.load %arg5[%c0_3, %c0_4] : memref<128x128xf32, #tpu.memory_space<vmem>>, vector<128x128xf32>
    %cst = arith.constant dense<0.000000e+00> : vector<256x128xf32>
    %4 = tpu.matmul %2, %3, %cst {dimension_numbers = #tpu.dot_dimension_numbers<[1], [0], [0], [1], [0, 0, 1, 1], [], []>} : vector<256x128xf32>, vector<128x128xf32>, vector<256x128xf32> -> vector<256x128xf32>
    %5 = vector.shape_cast %4 : vector<256x128xf32> to vector<32x8x128xf32>
    %c0_5 = arith.constant 0 : index
    %c0_6 = arith.constant 0 : index
    %c0_7 = arith.constant 0 : index
    %6 = vector.load %arg3[%c0_5, %c0_6, %c0_7] : memref<1x32x128xf32, #tpu.memory_space<vmem>>, vector<1x32x128xf32>
    %7 = vector.shape_cast %6 : vector<1x32x128xf32> to vector<32x128xf32>
    %8 = vector.shape_cast %7 : vector<32x128xf32> to vector<32x1x128xf32>
    %9 = vector.broadcast %8 : vector<32x1x128xf32> to vector<32x8x128xf32>
    %10 = arith.addf %5, %9 : vector<32x8x128xf32>
    %c0_8 = arith.constant 0 : index
    %c0_9 = arith.constant 0 : index
    %c0_10 = arith.constant 0 : index
    %11 = vector.load %arg4[%c0_8, %c0_9, %c0_10] : memref<1x8x128xf32, #tpu.memory_space<vmem>>, vector<1x8x128xf32>
    %12 = vector.shape_cast %11 : vector<1x8x128xf32> to vector<8x128xf32>
    %13 = vector.shape_cast %12 : vector<8x128xf32> to vector<1x8x128xf32>
    %14 = vector.broadcast %13 : vector<1x8x128xf32> to vector<32x8x128xf32>
    %15 = arith.addf %10, %14 : vector<32x8x128xf32>
    %c0_11 = arith.constant 0 : index
    %c0_12 = arith.constant 0 : index
    %c0_13 = arith.constant 0 : index
    %c0_14 = arith.constant 0 : index
    %16 = vector.load %arg6[%c0_11, %c0_12, %c0_13, %c0_14] : memref<1x32x8x128xf32, #tpu.memory_space<vmem>>, vector<1x32x8x128xf32>
    %17 = vector.shape_cast %16 : vector<1x32x8x128xf32> to vector<32x8x128xf32>
    %18 = vector.shape_cast %15 : vector<32x8x128xf32> to vector<1x32x8x128xf32>
    tpu.vector_store %arg6[%c0_11, %c0_12, %c0_13, %c0_14], %18 {strides = array<i32>} : memref<1x32x8x128xf32, #tpu.memory_space<vmem>>, vector<1x32x8x128xf32>,
    return
  }
  func.func @transform_0(%arg0: i32, %arg1: i32) -> (i32, i32, i32, i32) {
    %c0_i32 = arith.constant 0 : i32
    %c0_i32_0 = arith.constant 0 : i32
    %c0_i32_1 = arith.constant 0 : i32
    return %arg0, %arg1, %c0_i32, %c0_i32_0 : i32, i32, i32, i32
  }
  func.func @transform_1(%arg0: i32, %arg1: i32) -> (i32, i32, i32) {
    %c0_i32 = arith.constant 0 : i32
    %c0_i32_0 = arith.constant 0 : i32
    return %arg0, %arg1, %c0_i32 : i32, i32, i32
  }
  func.func @transform_2(%arg0: i32, %arg1: i32) -> (i32, i32, i32) {
    %c0_i32 = arith.constant 0 : i32
    %c0_i32_0 = arith.constant 0 : i32
    %c0_i32_1 = arith.constant 0 : i32
    return %arg0, %c0_i32, %c0_i32_0 : i32, i32, i32
  }
  func.func @transform_3(%arg0: i32, %arg1: i32) -> (i32, i32) {
    %c0_i32 = arith.constant 0 : i32
    %c0_i32_0 = arith.constant 0 : i32
    %c0_i32_1 = arith.constant 0 : i32
    return %c0_i32, %c0_i32_0 : i32, i32
  }
  func.func @transform_4(%arg0: i32, %arg1: i32) -> (i32, i32, i32, i32) {
    %c0_i32 = arith.constant 0 : i32
    %c0_i32_0 = arith.constant 0 : i32
    %c0_i32_1 = arith.constant 0 : i32
    return %arg0, %arg1, %c0_i32, %c0_i32_0 : i32, i32, i32, i32
  }
}

</mosaic_0001>

<bundles_post_ra>
// kernel: tpu_custom_call.1
= control target key start
LH: loop header
LB: loop body
LE: loop exit
PB: predicated region body
PF: predicated region fallthrough
CT: control target
= control target key end

     0   :  { %s1605_s0 = inlined_call_operand.hbm [shape: f32[2,32,8,128], index: 0, kind: input, shape index: {}]   ;;  %s1606_s1 = inlined_call_operand.hbm [shape: f32[2,32,128], index: 1, kind: input, shape index: {}]   ;;  %s1607_s2 = inlined_call_operand.hbm [shape: f32[2,8,128], index: 2, kind: input, shape index: {}]   ;;  %s1608_s3 = inlined_call_operand.hbm [shape: f32[128,128], index: 3, kind: input, shape index: {}]   ;;  %s1609_s4 = inlined_call_operand.hbm [shape: f32[2,32,8,128], index: 4, kind: output, shape index: {}]  }
   0x1   :  { %1616 = sst [smem:[#allocation18_spill]] %s1605_s0 }
   0x2   :  { %1617 = sst [smem:[#allocation19_spill]] %s1606_s1 }
   0x3   :  { %1618 = sst [smem:[#allocation20_spill]] %s1608_s3 }
   0x4   :  { %9 = vsyncpa [#allocation3], 0 }
   0x5   :  { %11 = vsyncpa [#allocation3 + $0x1], 0 }
   0x6   :  { %12 = vsyncpa [#allocation6], 0 }
   0x7   :  { %14 = vsyncpa [#allocation6 + $0x1], 0 }
   0x8   :  { %15 = vsyncpa [#allocation9], 0 }
   0x9   :  { %16 = vsyncpa [#allocation4], 0 }
   0xa   :  { %18 = vsyncpa [#allocation4 + $0x1], 0  ;;  %s1261_s15 = smov 0   ;;  %s1263_s16 = smov 0  }
   0xb   :  { %s1265_s17 = smov 0   ;;  %s1267_s18 = smov 0  }
   0xc   :  { %s1269_s19 = smov 0   ;;  %s1271_s20 = smov 0  }
   0xd LB: > { %1619 = sst [smem:[#allocation15_spill]] %s1217_s17  ;;  %s36_s21 = sadd.s32 1, %s1225_s19  ;;  %s1229_s20 = sphi %s1271_s20, %s24_s20   ;;  %s1225_s19 = sphi %s1269_s19, %s1638_s19   ;;  %s1221_s18 = sphi %s1267_s18, %s1637_s18   ;;  %s1217_s17 = sphi %s1265_s17, %s1633_s17   ;;  %s1213_s16 = sphi %s1263_s16, %s1636_s16   ;;  %s1209_s15 = sphi %s1261_s15, %s1635_s15  }
   0xe   : > { %s45_s22 = sadd.s32 1, %s1217_s17  ;;  %p38_p0 = scmp.ge.s32.totalorder %s36_s21, 2 }
   0xf   : > { %p52_p1 = scmp.ne.s32.totalorder %s1217_s17, %s1213_s16  ;;  %p53_p2 = scmp.eq.s32.totalorder %s1229_s20, 0 }
  0x10   : > { %s1640_s21 = smov (%p38_p0, %s36_s21), 0  ;;  %p861_p4 = scmp.ge.s32.totalorder %s1229_s20, 2 }
  0x11   : > { %1620 = sst [smem:[#allocation16_spill]] %s1640_s21  ;;  %p54_p3 = por %p53_p2, %p52_p1 }
  0x12   : > { %s40_s23 = ssub.s32 %s1225_s19, %s1640_s21  ;;  %p963_p6 = scmp.lt.s32.totalorder %s1229_s20, 2 }
  0x13   : > { %p43_p5 = scmp.eq.s32.totalorder %s40_s23, 0  ;;  %s1306_s24 = sand.u32 1, %s1217_s17  }
  0x14   : > { %s223_s25 = sand.u32 1, %s1229_s20   ;;  %p1312_p7 = pnand %p963_p6, %p54_p3 }
  0x15   : > { %s1310_s26 = scalar_select %p43_p5, %s1217_s17, %s45_s22  }
  0x16   : > { %s865_s28 = sshll.u32 %s1306_s24, 5  ;;  %s882_s29 = sshll.u32 %s1225_s19, 5 }
  0x17   : > { %1621 = sst [smem:[#allocation17_spill]] %s1310_s26  ;;  %s227_s7 = scalar_lea.vmem [#allocation5], %s865_s28 }
  0x18   : > { %s1623_s1 = sld [smem:[#allocation19_spill]]  ;;  %s237_s8 = sshll.u32 %s227_s7, 4  ;;  %s238_s8 = int_to_ptr.vmem [resolvable:$true] %s237_s8 }
  0x19   : > { %s1321_s10 = scalar_lea.sflag [#allocation6], %s223_s25  ;;  %s1610_s11 = smov 128  }
  0x1a   : > { %s1612_s12 = smov 8   ;;  %s1330_s13 = sadd.s32 4294967295, %s1229_s20  }
  0x1b   : > { %s858_s14 = sadd.s32 4294967294, %s1229_s20   ;;  %p58_p8 = scmp.ne.s32.totalorder %s1213_s16, %s1209_s15 }
  0x1c   : > { %p59_p9 = scmp.eq.s32.totalorder %s1330_s13, 0  ;;  %p159_p10 = scmp.eq.s32.totalorder %s1330_s13, 1 }
  0x1d   : > { %p165_p11 = scmp.eq.s32.totalorder %s858_s14, 1  ;;  %p859_p12 = scmp.ge.s32.totalorder %s1229_s20, 1 }
  0x1e   : > { %s234_s6 = scalar_lea.hbm %s1623_s1, %s882_s29  ;;  %p1340_p13 = por %p59_p9, %p58_p8 }
  0x1f   : > { %s235_s9 = sshll.u32 %s234_s6, 4  ;;  %p1347_p0 = por %p159_p10, %p52_p1  ;;  %s236_s9 = int_to_ptr.hbm [resolvable:$true] %s235_s9 }
  0x20   : > { %954 = dma.hbm_to_vmem [thread:$0]  (!%p1312_p7), %s236_s9, 512, %s238_s8, %s1321_s10, %s1610_s11, %s1610_s11, %s1612_s12  }
  0x21   : > { %p1351_p2 = por %p165_p11, %p58_p8  ;;  %p172_p3 = scmp.lt.s32.totalorder %s1229_s20, 3 }
  0x22   : > { %s1627_s3 = sld [smem:[#allocation20_spill]]  ;;  %s1233_s6 = smov [#allocation8]  }
  0x23   : > { %p1359_p5 = pnand %p859_p12, %p172_p3  ;;  %s185_s7 = sshll.u32 %s1233_s6, 4  ;;  %s186_s7 = int_to_ptr.vmem [resolvable:$true] %s185_s7 }
  0x24   : > { %s862_s8 = sshll.u32 %s1306_s24, 8  ;;  %s881_s9 = sshll.u32 %s1225_s19, 8 }
  0x25   : > { %p944_p1 = pneg %p1359_p5  ;;  %s203_s14 = scalar_lea.vmem [#allocation2], %s862_s8 }
  0x26   : > { %s213_s28 = sshll.u32 %s203_s14, 4  ;;  %s1629_s0 = sld [smem:[#allocation18_spill]]  ;;  %s214_s28 = int_to_ptr.vmem [resolvable:$true] %s213_s28 }
  0x27   : > { %p945_p6 = pnand %p944_p1, %p59_p9  ;;  %s1630_s1 = smov 8  }
  0x28   : > { %s183_s30 = sshll.u32 %s1627_s3, 4  ;;  %s1631_s3 = smov 128   ;;  %s184_s30 = int_to_ptr.hbm [resolvable:$true] %s183_s30 }
  0x29   : > { %947 = dma.hbm_to_vmem [thread:$0]  (!%p945_p6), %s184_s30, 2048, %s186_s7, [#allocation9], %s1631_s3, %s1631_s3, %s1630_s1  }
  0x2a   : > { %s868_s6 = sshll.u32 %s1306_s24, 3  ;;  %s200_s26 = scalar_lea.sflag [#allocation3], %s1306_s24 }
  0x2b   : > { %s869_s8 = sshll.u32 %s1225_s19, 3  ;;  %s1392_s24 = sand.u32 (!%p1359_p5), 1, %s1213_s16  }
  0x2c   : > { %s210_s12 = scalar_lea.hbm %s1629_s0, %s881_s9  ;;  %s255_s29 = scalar_lea.hbm %s1607_s2, %s869_s8 }
  0x2d   : > { %s211_s21 = sshll.u32 %s210_s12, 4  ;;  %s251_s9 = scalar_lea.vmem [#allocation7], %s868_s6  ;;  %s212_s21 = int_to_ptr.hbm [resolvable:$true] %s211_s21 }
  0x2e   : > { %951 = dma.hbm_to_vmem [thread:$0]  (!%p1312_p7), %s212_s21, 4096, %s214_s28, %s200_s26, %s1631_s3, %s1631_s3, %s1630_s1  }
  0x2f   : > { %s259_s0 = sshll.u32 %s251_s9, 4  ;;  %s257_s17 = sshll.u32 %s255_s29, 4  ;;  %s260_s0 = int_to_ptr.vmem [resolvable:$true] %s259_s0  ;;  %s258_s17 = int_to_ptr.hbm [resolvable:$true] %s257_s17 }
  0x30   : > { %957 = dma.hbm_to_vmem [thread:$0]  (!%p1312_p7), %s258_s17, 128, %s260_s0, %s1321_s10  }
  0x31   : > { %268 = sbr.rel (%p1359_p5) target bundleno = 290 (0x122), region = 36  ;;  %s871_s1 = sshll.u32 (!%p1359_p5), %s1392_s24, 8 }
  0x32   : > { %s271_s3 = scalar_lea.sflag (!%p1359_p5), [#allocation3], %s1392_s24  ;;  %s1398_s21 = scalar_lea.vmem (!%p1359_p5), [#allocation2], %s871_s1 }
  0x36   : > { %1192 = dma.done.wait (%p1340_p13), %s271_s3, 4096  }
  0x37   : > { %1194 = vsyncadd (%p1340_p13), %s271_s3, 4294963200  ;;  %s280_s0 = sand.u32 1, %s1330_s13   ;;  %s872_s17 = sshll.u32 %s1392_s24, 5 }
  0x38   : > { %s281_s26 = scalar_lea.sflag [#allocation6], %s280_s0  ;;  %s1406_s27 = scalar_lea.vmem [#allocation5], %s872_s17 }
  0x39   : > { %1196 = dma.done.wait (%p1340_p13), %s281_s26, 640  }
  0x3a   : > { %1198 = vsyncadd (%p1340_p13), %s281_s26, 4294966656  ;;  %s873_s10 = sshll.u32 %s1392_s24, 3 }
  0x3b   : > { %s1413_s12 = scalar_lea.vmem [#allocation7], %s873_s10 }
  0x3c   : > { %1200 = dma.done.wait (%p59_p9), [#allocation9], 2048  }
  0x3d   : > { %1202 = vsyncadd (%p59_p9), [#allocation9], 4294965248  ;;  %v385_v0 = vld [vmem:[#allocation8 + $0x78] sm:$0xff]  ;;  %v384_v1 = vld [vmem:[#allocation8 + $0x70] sm:$0xff]  ;;  %s1478_s13 = scalar_lea.vmem [#allocation10], %s871_s1  ;;  %s883_s22 = sshll.u32 %s1221_s18, 8 }
  0x3e   : > { %885 = vmatpush.msra.mxu2 %v385_v0  ;;  %886 = vmatpush.msra.mxu3 %v385_v0  ;;  %v383_v2 = vld [vmem:[#allocation8 + $0x68] sm:$0xff]  ;;  %v382_v3 = vld [vmem:[#allocation8 + $0x60] sm:$0xff]  ;;  %v381_v4 = vld [vmem:[#allocation8 + $0x58] sm:$0xff]  ;;  %s710_s7 = scalar_lea.hbm %s1609_s4, %s883_s22  ;;  %s711_s18 = sshll.u32 %s1478_s13, 4  ;;  %s712_s18 = int_to_ptr.vmem [resolvable:$true] %s711_s18 }
  0x3f   : > { %386 = vmatpush.msra.mxu0 %v385_v0  ;;  %884 = vmatpush.msra.mxu1 %v385_v0  ;;  %v380_v5 = vld [vmem:[#allocation8 + $0x50] sm:$0xff]  ;;  %v379_v6 = vld [vmem:[#allocation8 + $0x48] sm:$0xff]  ;;  %v378_v7 = vld [vmem:[#allocation8 + $0x40] sm:$0xff]  ;;  %s713_s28 = sshll.u32 %s710_s7, 4  ;;  %s697_s6 = scalar_lea.sflag [#allocation4], %s1392_s24  ;;  %s714_s28 = int_to_ptr.hbm [resolvable:$true] %s713_s28 }
  0x40   : > { %888 = vmatpush.msra.mxu2 %v384_v1  ;;  %889 = vmatpush.msra.mxu3 %v384_v1  ;;  %v377_v8 = vld [vmem:[#allocation8 + $0x38] sm:$0xff]  ;;  %v376_v9 = vld [vmem:[#allocation8 + $0x30] sm:$0xff]  ;;  %v375_v10 = vld [vmem:[#allocation8 + $0x28] sm:$0xff]  ;;  %s1153_s8 = sshra.s32 %s714_s28, 4  ;;  %s1159_s9 = scalar_lea.hbm %s1609_s4, 512  ;;  %s1154_s8 = int_to_ptr.hbm [resolvable:$true] %s1153_s8 }
  0x41   : > { %387 = vmatpush.msra.mxu0 %v384_v1  ;;  %887 = vmatpush.msra.mxu1 %v384_v1  ;;  %v374_v11 = vld [vmem:[#allocation8 + $0x20] sm:$0xff]  ;;  %v373_v12 = vld [vmem:[#allocation8 + $0x18] sm:$0xff]  ;;  %v372_v13 = vld [vmem:[#allocation8 + $0x10] sm:$0xff]  ;;  %s1155_s14 = scalar_lea.hbm %s1154_s8, 256  ;;  %p1160_p10 = scmp.lt.s32.totalorder %s1154_s8, %s1609_s4 }
  0x42   : > { %891 = vmatpush.msra.mxu2 %v383_v2  ;;  %892 = vmatpush.msra.mxu3 %v383_v2  ;;  %v371_v14 = vld [vmem:[#allocation8 + $0x8] sm:$0xff]  ;;  %v370_v15 = vld [vmem:[#allocation8] sm:$0xff]  ;;  %v354_v16 = vld [vmem:[%s1398_s21 + $0x80] sm:$0xff]  ;;  %p1156_p7 = scmp.ne.s32.totalorder %s1154_s8, %s1155_s14  ;;  %p1161_p11 = scmp.lt.s32.totalorder %s1159_s9, %s1155_s14 }
  0x43   : > { %388 = vmatpush.msra.mxu0 %v383_v2  ;;  %890 = vmatpush.msra.mxu1 %v383_v2  ;;  %v362_v17 = vld [vmem:[%s1398_s21 + $0xc0] sm:$0xff]  ;;  %v355_v20 = vld [vmem:[%s1398_s21 + $0x88] sm:$0xff]  ;;  %v356_v24 = vld [vmem:[%s1398_s21 + $0x90] sm:$0xff] }
  0x44   : > { %894 = vmatpush.msra.mxu2 %v382_v3  ;;  %895 = vmatpush.msra.mxu3 %v382_v3  ;;  %v338_v18 = vld [vmem:[%s1398_s21] sm:$0xff]  ;;  %v363_v21 = vld [vmem:[%s1398_s21 + $0xc8] sm:$0xff]  ;;  %v364_v25 = vld [vmem:[%s1398_s21 + $0xd0] sm:$0xff]  ;;  %p1157_p8 = pnand %p1156_p7, %p1347_p0  ;;  %p1162_p12 = por %p1161_p11, %p1160_p10 }
  0x45   : > { %389 = vmatpush.msra.mxu0 %v382_v3  ;;  %893 = vmatpush.msra.mxu1 %v382_v3  ;;  %v346_v19 = vld [vmem:[%s1398_s21 + $0x40] sm:$0xff]  ;;  %v339_v22 = vld [vmem:[%s1398_s21 + $0x8] sm:$0xff]  ;;  %v340_v26 = vld [vmem:[%s1398_s21 + $0x10] sm:$0xff] }
  0x46   : > { %897 = vmatpush.msra.mxu2 %v381_v4  ;;  %898 = vmatpush.msra.mxu3 %v381_v4  ;;  %v347_v23 = vld [vmem:[%s1398_s21 + $0x48] sm:$0xff]  ;;  %v348_v27 = vld [vmem:[%s1398_s21 + $0x50] sm:$0xff]  ;;  %v357_v28 = vld [vmem:[%s1398_s21 + $0x98] sm:$0xff]  ;;  %p1158_p9 = pneg %p1157_p8 }
  0x47   : > { %390 = vmatpush.msra.mxu0 %v381_v4  ;;  %896 = vmatpush.msra.mxu1 %v381_v4  ;;  %v365_v29 = vld [vmem:[%s1398_s21 + $0xd8] sm:$0xff]  ;;  %v358_v32 = vld [vmem:[%s1398_s21 + $0xa0] sm:$0xff]  ;;  %v359_v36 = vld [vmem:[%s1398_s21 + $0xa8] sm:$0xff] }
  0x48   : > { %900 = vmatpush.msra.mxu2 %v380_v5  ;;  %901 = vmatpush.msra.mxu3 %v380_v5  ;;  %v341_v30 = vld [vmem:[%s1398_s21 + $0x18] sm:$0xff]  ;;  %v366_v33 = vld [vmem:[%s1398_s21 + $0xe0] sm:$0xff]  ;;  %v367_v37 = vld [vmem:[%s1398_s21 + $0xe8] sm:$0xff]  ;;  %p1163_p13 = pnand %p1162_p12, %p1158_p9 }
  0x49   : > { %391 = vmatpush.msra.mxu0 %v380_v5  ;;  %899 = vmatpush.msra.mxu1 %v380_v5  ;;  %v349_v31 = vld [vmem:[%s1398_s21 + $0x58] sm:$0xff]  ;;  %v342_v34 = vld [vmem:[%s1398_s21 + $0x20] sm:$0xff]  ;;  %v343_v38 = vld [vmem:[%s1398_s21 + $0x28] sm:$0xff] }
  0x4a   : > { %903 = vmatpush.msra.mxu2 %v379_v6  ;;  %904 = vmatpush.msra.mxu3 %v379_v6  ;;  %v350_v35 = vld [vmem:[%s1398_s21 + $0x60] sm:$0xff]  ;;  %v351_v39 = vld [vmem:[%s1398_s21 + $0x68] sm:$0xff]  ;;  %v360_v40 = vld [vmem:[%s1398_s21 + $0xb0] sm:$0xff] }
  0x4b   : > { %392 = vmatpush.msra.mxu0 %v379_v6  ;;  %902 = vmatpush.msra.mxu1 %v379_v6  ;;  %v368_v41 = vld [vmem:[%s1398_s21 + $0xf0] sm:$0xff]  ;;  %v361_v44 = vld [vmem:[%s1398_s21 + $0xb8] sm:$0xff]  ;;  %v1452_v48 = vld [vmem:[%s1406_s27] sm:$0xff] }
  0x4c   : > { %906 = vmatpush.msra.mxu2 %v378_v7  ;;  %907 = vmatpush.msra.mxu3 %v378_v7  ;;  %v344_v42 = vld [vmem:[%s1398_s21 + $0x30] sm:$0xff]  ;;  %v369_v45 = vld [vmem:[%s1398_s21 + $0xf8] sm:$0xff]  ;;  %v1455_v49 = vld [vmem:[%s1406_s27 + $0x8] sm:$0xff]  ;;  %v535_v50 = vperm.slane %v1452_v48, 0  ;;  %v507_v61 = vrot.slane %v1452_v48, 1 }
  0x4d   : > { %393 = vmatpush.msra.mxu0 %v378_v7  ;;  %905 = vmatpush.msra.mxu1 %v378_v7  ;;  %v352_v43 = vld [vmem:[%s1398_s21 + $0x70] sm:$0xff]  ;;  %v345_v46 = vld [vmem:[%s1398_s21 + $0x38] sm:$0xff]  ;;  %v543_v51 = vperm.slane %v1455_v49, 0  ;;  %v1466_v55 = vld [vmem:[%s1413_s12] sm:$0xff]  ;;  %v514_v62 = vrot.slane %v1455_v49, 1 }
  0x4e   : > { %909 = vmatpush.msra.mxu2 %v377_v8  ;;  %910 = vmatpush.msra.mxu3 %v377_v8  ;;  %v353_v47 = vld [vmem:[%s1398_s21 + $0x78] sm:$0xff]  ;;  %v1460_v52 = vld [vmem:[%s1406_s27 + $0x10] sm:$0xff]  ;;  %v536_v7 = vperm.slane %v507_v61, 0 }
  0x4f   : > { %394 = vmatpush.msra.mxu0 %v377_v8  ;;  %908 = vmatpush.msra.mxu1 %v377_v8  ;;  %v1463_v53 = vld [vmem:[%s1406_s27 + $0x18] sm:$0xff]  ;;  %v551_v57 = vperm.slane %v1460_v52, 0  ;;  %v521_v3 = vrot.slane %v1460_v52, 1  ;;  %v544_v8 = vperm.slane %v514_v62, 0  ;;  %v510_v62 = vrot.slane %v1452_v48, 4 }
  0x50   : > { %912 = vmatpush.msra.mxu2 %v376_v9  ;;  %913 = vmatpush.msra.mxu3 %v376_v9  ;;  %v559_v58 = vperm.slane %v1463_v53, 0  ;;  %v528_v4 = vrot.slane %v1463_v53, 1 }
  0x51   : > { %395 = vmatpush.msra.mxu0 %v376_v9  ;;  %911 = vmatpush.msra.mxu1 %v376_v9 }
  0x52   : > { %915 = vmatpush.msra.mxu2 %v375_v10  ;;  %916 = vmatpush.msra.mxu3 %v375_v10 }
  0x53   : > { %396 = vmatpush.msra.mxu0 %v375_v10  ;;  %914 = vmatpush.msra.mxu1 %v375_v10 }
  0x54   : > { %918 = vmatpush.msra.mxu2 %v374_v11  ;;  %919 = vmatpush.msra.mxu3 %v374_v11 }
  0x55   : > { %397 = vmatpush.msra.mxu0 %v374_v11  ;;  %917 = vmatpush.msra.mxu1 %v374_v11 }
  0x56   : > { %921 = vmatpush.msra.mxu2 %v373_v12  ;;  %922 = vmatpush.msra.mxu3 %v373_v12 }
  0x57   : > { %398 = vmatpush.msra.mxu0 %v373_v12  ;;  %920 = vmatpush.msra.mxu1 %v373_v12 }
  0x58   : > { %924 = vmatpush.msra.mxu2 %v372_v13  ;;  %925 = vmatpush.msra.mxu3 %v372_v13 }
  0x59   : > { %399 = vmatpush.msra.mxu0 %v372_v13  ;;  %923 = vmatpush.msra.mxu1 %v372_v13  ;;  %v552_v13 = vperm.slane %v521_v3, 0 }
  0x5a   : > { %927 = vmatpush.msra.mxu2 %v371_v14  ;;  %928 = vmatpush.msra.mxu3 %v371_v14 }
  0x5b   : > { %400 = vmatpush.msra.mxu0 %v371_v14  ;;  %926 = vmatpush.msra.mxu1 %v371_v14  ;;  %v560_v14 = vperm.slane %v528_v4, 0  ;;  %v524_v4 = vrot.slane %v1460_v52, 4 }
  0x5c   : > { %930 = vmatpush.msra.mxu2 %v370_v15  ;;  %931 = vmatpush.msra.mxu3 %v370_v15 }
  0x5d   : > { %450 = vmatmul.f32.vlgmr.msra.gmra.mxu2 %v354_v16  ;;  %474 = vmatmul.f32.vlgmr.msra.gmra.mxu3 %v362_v17  ;;  %v508_v17 = vrot.slane %v1452_v48, 2 }
  0x5e   : > { %401 = vmatpush.msra.mxu0 %v370_v15  ;;  %929 = vmatpush.msra.mxu1 %v370_v15 }
  0x5f   : > { %402 = vmatmul.f32.vlgmr.msra.gmra.mxu0 %v338_v18  ;;  %426 = vmatmul.f32.vlgmr.msra.gmra.mxu1 %v346_v19  ;;  %v515_v18 = vrot.slane %v1455_v49, 2 }
  0x65   : > { %453 = vmatmul.f32.gmra.mxu2 %v355_v20  ;;  %477 = vmatmul.f32.gmra.mxu3 %v363_v21 }
  0x67   : > { %405 = vmatmul.f32.gmra.mxu0 %v339_v22  ;;  %429 = vmatmul.f32.gmra.mxu1 %v347_v23  ;;  %v522_v23 = vrot.slane %v1460_v52, 2 }
  0x6d   : > { %456 = vmatmul.f32.gmra.mxu2 %v356_v24  ;;  %480 = vmatmul.f32.gmra.mxu3 %v364_v25  ;;  %v529_v24 = vrot.slane %v1463_v53, 2 }
  0x6f   : > { %408 = vmatmul.f32.gmra.mxu0 %v340_v26  ;;  %432 = vmatmul.f32.gmra.mxu1 %v348_v27  ;;  %v537_v27 = vperm.slane %v508_v17, 0 }
  0x75   : > { %459 = vmatmul.f32.gmra.mxu2 %v357_v28  ;;  %483 = vmatmul.f32.gmra.mxu3 %v365_v29  ;;  %v545_v28 = vperm.slane %v515_v18, 0  ;;  %v511_v18 = vrot.slane %v1452_v48, 5 }
  0x77   : > { %411 = vmatmul.f32.gmra.mxu0 %v341_v30  ;;  %435 = vmatmul.f32.gmra.mxu1 %v349_v31 }
  0x7d   : > { %462 = vmatmul.f32.gmra.mxu2 %v358_v32  ;;  %486 = vmatmul.f32.gmra.mxu3 %v366_v33  ;;  %v553_v33 = vperm.slane %v522_v23, 0 }
  0x7f   : > { %414 = vmatmul.f32.gmra.mxu0 %v342_v34  ;;  %438 = vmatmul.f32.gmra.mxu1 %v350_v35  ;;  %v561_v34 = vperm.slane %v529_v24, 0  ;;  %v525_v24 = vrot.slane %v1460_v52, 5 }
  0x85   : > { %465 = vmatmul.f32.gmra.mxu2 %v359_v36  ;;  %489 = vmatmul.f32.gmra.mxu3 %v367_v37  ;;  %v509_v37 = vrot.slane %v1452_v48, 3 }
  0x87   : > { %417 = vmatmul.f32.gmra.mxu0 %v343_v38  ;;  %441 = vmatmul.f32.gmra.mxu1 %v351_v39  ;;  %v516_v38 = vrot.slane %v1455_v49, 3 }
  0x8d   : > { %468 = vmatmul.f32.gmra.mxu2 %v360_v40  ;;  %492 = vmatmul.f32.gmra.mxu3 %v368_v41 }
  0x8f   : > { %420 = vmatmul.f32.gmra.mxu0 %v344_v42  ;;  %444 = vmatmul.f32.gmra.mxu1 %v352_v43  ;;  %v523_v43 = vrot.slane %v1460_v52, 3 }
  0x95   : > { %471 = vmatmul.f32.gmra.mxu2 %v361_v44  ;;  %495 = vmatmul.f32.gmra.mxu3 %v369_v45  ;;  %v530_v44 = vrot.slane %v1463_v53, 3 }
  0x97   : > { %423 = vmatmul.f32.gmra.mxu0 %v345_v46  ;;  %447 = vmatmul.f32.gmra.mxu1 %v353_v47  ;;  %v538_v47 = vperm.slane %v509_v37, 0 }
  0xdc   : > { %v403_v54 = vpop.f32.mrf.mxu0  ;;  %v427_v56 = vpop.f32.mrf.mxu1 }
  0xdd   : > { %v599_v59 = vadd.f32 %v535_v50, %v403_v54  ;;  %v607_v60 = vadd.f32 %v543_v51, %v427_v56  ;;  %v546_v50 = vperm.slane %v516_v38, 0  ;;  %v512_v38 = vrot.slane %v1452_v48, 6 }
  0xdf   : > { %v632_v63 = vadd.f32 %v1466_v55, %v599_v59  ;;  %v640_v0 = vadd.f32 %v1466_v55, %v607_v60  ;;  %v562_v59 = vperm.slane %v530_v44, 0  ;;  %v526_v44 = vrot.slane %v1460_v52, 6 }
  0xe0   : > { %v451_v1 = vpop.f32.mrf.mxu2  ;;  %v475_v2 = vpop.f32.mrf.mxu3 }
  0xe1   : > { %664 = vst [vmem:[%s1478_s13] sm:$0xff] %v632_v63  ;;  %v615_v5 = vadd.f32 %v551_v57, %v451_v1  ;;  %v623_v6 = vadd.f32 %v559_v58, %v475_v2  ;;  %v554_v58 = vperm.slane %v523_v43, 0  ;;  %v517_v63 = vrot.slane %v1455_v49, 4 }
  0xe2   : > { %672 = vst [vmem:[%s1478_s13 + $0x40] sm:$0xff] %v640_v0 }
  0xe3   : > { %v648_v9 = vadd.f32 %v1466_v55, %v615_v5  ;;  %v656_v10 = vadd.f32 %v1466_v55, %v623_v6  ;;  %v531_v5 = vrot.slane %v1463_v53, 4 }
  0xe4   : > { %v406_v11 = vpop.f32.mrf.mxu0  ;;  %v430_v12 = vpop.f32.mrf.mxu1 }
  0xe5   : > { %680 = vst [vmem:[%s1478_s13 + $0x80] sm:$0xff] %v648_v9  ;;  %v600_v15 = vadd.f32 %v536_v7, %v406_v11  ;;  %v608_v16 = vadd.f32 %v544_v8, %v430_v12  ;;  %v539_v8 = vperm.slane %v510_v62, 0  ;;  %v547_v9 = vperm.slane %v517_v63, 0 }
  0xe6   : > { %688 = vst [vmem:[%s1478_s13 + $0xc0] sm:$0xff] %v656_v10  ;;  %v513_v63 = vrot.slane %v1452_v48, 7 }
  0xe7   : > { %v633_v19 = vadd.f32 %v1466_v55, %v600_v15  ;;  %v641_v20 = vadd.f32 %v1466_v55, %v608_v16  ;;  %v563_v15 = vperm.slane %v531_v5, 0  ;;  %v527_v5 = vrot.slane %v1460_v52, 7 }
  0xe8   : > { %v454_v21 = vpop.f32.mrf.mxu2  ;;  %v478_v22 = vpop.f32.mrf.mxu3 }
  0xe9   : > { %665 = vst [vmem:[%s1478_s13 + $0x8] sm:$0xff] %v633_v19  ;;  %v616_v25 = vadd.f32 %v552_v13, %v454_v21  ;;  %v624_v26 = vadd.f32 %v560_v14, %v478_v22  ;;  %v555_v14 = vperm.slane %v524_v4, 0  ;;  %v518_v19 = vrot.slane %v1455_v49, 5 }
  0xea   : > { %673 = vst [vmem:[%s1478_s13 + $0x48] sm:$0xff] %v641_v20 }
  0xeb   : > { %v649_v29 = vadd.f32 %v1466_v55, %v616_v25  ;;  %v657_v30 = vadd.f32 %v1466_v55, %v624_v26  ;;  %v532_v25 = vrot.slane %v1463_v53, 5 }
  0xec   : > { %v409_v31 = vpop.f32.mrf.mxu0  ;;  %v433_v32 = vpop.f32.mrf.mxu1 }
  0xed   : > { %681 = vst [vmem:[%s1478_s13 + $0x88] sm:$0xff] %v649_v29  ;;  %v601_v35 = vadd.f32 %v537_v27, %v409_v31  ;;  %v609_v36 = vadd.f32 %v545_v28, %v433_v32  ;;  %v540_v28 = vperm.slane %v511_v18, 0  ;;  %v548_v29 = vperm.slane %v518_v19, 0 }
  0xee   : > { %689 = vst [vmem:[%s1478_s13 + $0xc8] sm:$0xff] %v657_v30 }
  0xef   : > { %v634_v39 = vadd.f32 %v1466_v55, %v601_v35  ;;  %v642_v40 = vadd.f32 %v1466_v55, %v609_v36  ;;  %v564_v35 = vperm.slane %v532_v25, 0 }
  0xf0   : > { %v457_v41 = vpop.f32.mrf.mxu2  ;;  %v481_v42 = vpop.f32.mrf.mxu3 }
  0xf1   : > { %666 = vst [vmem:[%s1478_s13 + $0x10] sm:$0xff] %v634_v39  ;;  %v617_v45 = vadd.f32 %v553_v33, %v457_v41  ;;  %v625_v46 = vadd.f32 %v561_v34, %v481_v42  ;;  %v556_v34 = vperm.slane %v525_v24, 0  ;;  %v519_v39 = vrot.slane %v1455_v49, 6 }
  0xf2   : > { %674 = vst [vmem:[%s1478_s13 + $0x50] sm:$0xff] %v642_v40 }
  0xf3   : > { %v650_v51 = vadd.f32 %v1466_v55, %v617_v45  ;;  %v658_v54 = vadd.f32 %v1466_v55, %v625_v46  ;;  %v533_v45 = vrot.slane %v1463_v53, 6 }
  0xf4   : > { %v412_v56 = vpop.f32.mrf.mxu0  ;;  %v436_v57 = vpop.f32.mrf.mxu1 }
  0xf5   : > { %682 = vst [vmem:[%s1478_s13 + $0x90] sm:$0xff] %v650_v51  ;;  %v602_v60 = vadd.f32 %v538_v47, %v412_v56  ;;  %v610_v61 = vadd.f32 %v546_v50, %v436_v57  ;;  %v541_v50 = vperm.slane %v512_v38, 0  ;;  %v549_v51 = vperm.slane %v519_v39, 0 }
  0xf6   : > { %690 = vst [vmem:[%s1478_s13 + $0xd0] sm:$0xff] %v658_v54 }
  0xf7   : > { %v635_v0 = vadd.f32 %v1466_v55, %v602_v60  ;;  %v643_v1 = vadd.f32 %v1466_v55, %v610_v61  ;;  %v565_v60 = vperm.slane %v533_v45, 0 }
  0xf8   : > { %v460_v2 = vpop.f32.mrf.mxu2  ;;  %v484_v3 = vpop.f32.mrf.mxu3 }
  0xf9   : > { %667 = vst [vmem:[%s1478_s13 + $0x18] sm:$0xff] %v635_v0  ;;  %v618_v6 = vadd.f32 %v554_v58, %v460_v2  ;;  %v626_v7 = vadd.f32 %v562_v59, %v484_v3  ;;  %v557_v59 = vperm.slane %v526_v44, 0  ;;  %v520_v0 = vrot.slane %v1455_v49, 7 }
  0xfa   : > { %675 = vst [vmem:[%s1478_s13 + $0x58] sm:$0xff] %v643_v1 }
  0xfb   : > { %v651_v10 = vadd.f32 %v1466_v55, %v618_v6  ;;  %v659_v11 = vadd.f32 %v1466_v55, %v626_v7  ;;  %v534_v6 = vrot.slane %v1463_v53, 7  ;;  %v550_v48 = vperm.slane %v520_v0, 0 }
  0xfc   : > { %v415_v12 = vpop.f32.mrf.mxu0  ;;  %v439_v13 = vpop.f32.mrf.mxu1 }
  0xfd   : > { %683 = vst [vmem:[%s1478_s13 + $0x98] sm:$0xff] %v651_v10  ;;  %v603_v16 = vadd.f32 %v539_v8, %v415_v12  ;;  %v611_v17 = vadd.f32 %v547_v9, %v439_v13  ;;  %v542_v9 = vperm.slane %v513_v63, 0  ;;  %v558_v13 = vperm.slane %v527_v5, 0 }
  0xfe   : > { %691 = vst [vmem:[%s1478_s13 + $0xd8] sm:$0xff] %v659_v11 }
  0xff   : > { %v636_v20 = vadd.f32 %v1466_v55, %v603_v16  ;;  %v644_v21 = vadd.f32 %v1466_v55, %v611_v17 }
 0x100   : > { %v463_v22 = vpop.f32.mrf.mxu2  ;;  %v487_v23 = vpop.f32.mrf.mxu3 }
 0x101   : > { %668 = vst [vmem:[%s1478_s13 + $0x20] sm:$0xff] %v636_v20  ;;  %v619_v26 = vadd.f32 %v555_v14, %v463_v22  ;;  %v627_v27 = vadd.f32 %v563_v15, %v487_v23  ;;  %v566_v14 = vperm.slane %v534_v6, 0 }
 0x102   : > { %676 = vst [vmem:[%s1478_s13 + $0x60] sm:$0xff] %v644_v21 }
 0x103   : > { %v652_v30 = vadd.f32 %v1466_v55, %v619_v26  ;;  %v660_v31 = vadd.f32 %v1466_v55, %v627_v27 }
 0x104   : > { %v418_v32 = vpop.f32.mrf.mxu0  ;;  %v442_v33 = vpop.f32.mrf.mxu1 }
 0x105   : > { %684 = vst [vmem:[%s1478_s13 + $0xa0] sm:$0xff] %v652_v30  ;;  %v604_v36 = vadd.f32 %v540_v28, %v418_v32  ;;  %v612_v37 = vadd.f32 %v548_v29, %v442_v33 }
 0x106   : > { %692 = vst [vmem:[%s1478_s13 + $0xe0] sm:$0xff] %v660_v31 }
 0x107   : > { %v637_v40 = vadd.f32 %v1466_v55, %v604_v36  ;;  %v645_v41 = vadd.f32 %v1466_v55, %v612_v37 }
 0x108   : > { %v466_v42 = vpop.f32.mrf.mxu2  ;;  %v490_v43 = vpop.f32.mrf.mxu3 }
 0x109   : > { %669 = vst [vmem:[%s1478_s13 + $0x28] sm:$0xff] %v637_v40  ;;  %v620_v46 = vadd.f32 %v556_v34, %v466_v42  ;;  %v628_v47 = vadd.f32 %v564_v35, %v490_v43 }
 0x10a   : > { %677 = vst [vmem:[%s1478_s13 + $0x68] sm:$0xff] %v645_v41 }
 0x10b   : > { %v653_v54 = vadd.f32 %v1466_v55, %v620_v46  ;;  %v661_v56 = vadd.f32 %v1466_v55, %v628_v47 }
 0x10c   : > { %v421_v57 = vpop.f32.mrf.mxu0  ;;  %v445_v58 = vpop.f32.mrf.mxu1 }
 0x10d   : > { %685 = vst [vmem:[%s1478_s13 + $0xa8] sm:$0xff] %v653_v54  ;;  %v605_v61 = vadd.f32 %v541_v50, %v421_v57  ;;  %v613_v62 = vadd.f32 %v549_v51, %v445_v58 }
 0x10e   : > { %693 = vst [vmem:[%s1478_s13 + $0xe8] sm:$0xff] %v661_v56 }
 0x10f   : > { %v638_v1 = vadd.f32 %v1466_v55, %v605_v61  ;;  %v646_v2 = vadd.f32 %v1466_v55, %v613_v62 }
 0x110   : > { %v469_v3 = vpop.f32.mrf.mxu2  ;;  %v493_v4 = vpop.f32.mrf.mxu3 }
 0x111   : > { %670 = vst [vmem:[%s1478_s13 + $0x30] sm:$0xff] %v638_v1  ;;  %v621_v7 = vadd.f32 %v557_v59, %v469_v3  ;;  %v629_v8 = vadd.f32 %v565_v60, %v493_v4 }
 0x112   : > { %678 = vst [vmem:[%s1478_s13 + $0x70] sm:$0xff] %v646_v2 }
 0x113   : > { %v654_v49 = vadd.f32 %v1466_v55, %v621_v7  ;;  %v662_v10 = vadd.f32 %v1466_v55, %v629_v8 }
 0x114   : > { %v424_v11 = vpop.f32.mrf.mxu0  ;;  %v448_v12 = vpop.f32.mrf.mxu1 }
 0x115   : > { %686 = vst [vmem:[%s1478_s13 + $0xb0] sm:$0xff] %v654_v49  ;;  %v606_v52 = vadd.f32 %v542_v9, %v424_v11  ;;  %v614_v53 = vadd.f32 %v550_v48, %v448_v12 }
 0x116   : > { %694 = vst [vmem:[%s1478_s13 + $0xf0] sm:$0xff] %v662_v10 }
 0x117   : > { %v639_v15 = vadd.f32 %v1466_v55, %v606_v52  ;;  %v647_v16 = vadd.f32 %v1466_v55, %v614_v53 }
 0x118   : > { %v472_v17 = vpop.f32.mrf.mxu2  ;;  %v496_v18 = vpop.f32.mrf.mxu3 }
 0x119   : > { %671 = vst [vmem:[%s1478_s13 + $0x38] sm:$0xff] %v639_v15  ;;  %v622_v19 = vadd.f32 %v558_v13, %v472_v17  ;;  %v630_v20 = vadd.f32 %v566_v14, %v496_v18 }
 0x11a   : > { %679 = vst [vmem:[%s1478_s13 + $0x78] sm:$0xff] %v647_v16 }
 0x11b   : > { %v655_v21 = vadd.f32 %v1466_v55, %v622_v19  ;;  %v663_v22 = vadd.f32 %v1466_v55, %v630_v20 }
 0x11d   : > { %687 = vst [vmem:[%s1478_s13 + $0xb8] sm:$0xff] %v655_v21 }
 0x11e   : > { %695 = vst [vmem:[%s1478_s13 + $0xf8] sm:$0xff] %v663_v22 }
 0x11f   : > { %1166 = shalt.err (!%p1163_p13)
}
 0x120   : > { %s1234_s24 = smov 128   ;;  %s1235_s21 = smov 8  }
 0x121   : > { %942 = dma.vmem_to_hbm [thread:$0]  (%p1347_p0), %s712_s18, 4096, %s714_s28, %s697_s6, %s1234_s24, %s1234_s24, %s1235_s21  }
 0x122 PF: > { %s728_s0 = sand.u32 1, %s1209_s15   ;;  %p959_p3 = pnand %p861_p4, %p1351_p2 }
 0x123   : > { %s729_s17 = scalar_lea.sflag [#allocation4], %s728_s0 }
 0x124   : > { %p960_p5 = pneg %p959_p3 }
 0x126   : > { %1204 = dma.done.wait (%p960_p5), %s729_s17, 4096  }
 0x127   : > { %1206 = vsyncadd (%p960_p5), %s729_s17, 4294963200  ;;  %s24_s20 = sadd.s32 1, %s1229_s20   ;;  %s1632_s26 = sld [smem:[#allocation15_spill]] }
 0x128   : > { %p21_p1 = scmp.ge.s32.totalorder %s24_s20, 4   ;;  %s1633_s17 = sld [smem:[#allocation17_spill]] }
 0x129   : > { %s1634_s23 = sld [smem:[#allocation16_spill]]  ;;  %s1635_s15 = smov %s1213_s16 }
 0x12a   : > { %s1637_s18 = smov %s1225_s19 }
 0x12b   :  { %23 = sbr.rel (!%p21_p1) target bundleno = 13 (0xd), region = 109 }
 0x12d   : > { %s1636_s16 = smov %s1632_s26 }
 0x12f   : > { %s1638_s19 = smov %s1634_s23 }
 0x130   :  { %735 = vsyncpa [#allocation3], 1 }
 0x131   :  { %737 = vsyncpa [#allocation3 + $0x1], 1 }
 0x132   :  { %738 = vsyncpa [#allocation6], 1 }
 0x133   :  { %740 = vsyncpa [#allocation6 + $0x1], 1 }
 0x134   :  { %741 = vsyncpa [#allocation9], 1 }
 0x135   :  { %742 = vsyncpa [#allocation4], 1 }
 0x136   :  { %744 = vsyncpa [#allocation4 + $0x1], 1 }

</bundles_post_ra>
